<compile_context>
chip_gen: v7x
topology: tpu7x:2x2x1
jax: 0.10.0
libtpu: 0.0.40
codegen_flags: <defaults>
</compile_context>

<pallas_src>
import jax
import jax.numpy as jnp
from jax.experimental import pallas as pl
from jax.experimental.pallas import tpu as pltpu


def _hbm_copy_kernel(x_hbm, o_hbm, sem):
    # Whole-array HBM -> HBM DMA.  Placeholder for the (absent) aggregation
    # compute of the reference module: a real aggregator would instead DMA
    # tiles into VMEM, run MXU matmuls with an f32 accumulator, and write
    # lane-dense output blocks.
    cp = pltpu.make_async_copy(x_hbm, o_hbm, sem)
    cp.start()
    cp.wait()


def pallas_passthrough(x2d: jax.Array, *, force_kernel: bool = False) -> jax.Array:
    """Identity pass-through of a 2-D slab.

    Default path returns the input as-is (zero HBM traffic).  With
    force_kernel=True the value is round-tripped through a single
    HBM->HBM DMA issued from a Pallas kernel (copy skeleton).
    """
    if not force_kernel:
        # Zero-compute identity: skipping the call removes 100% of the HBM
        # round trip and the kernel launch cost.
        return x2d

    rows, lanes = x2d.shape
    itemsize = jnp.dtype(x2d.dtype).itemsize
    nbytes = rows * lanes * itemsize

    return pl.pallas_call(
        _hbm_copy_kernel,
        out_shape=jax.ShapeDtypeStruct((rows, lanes), x2d.dtype),
        # No grid: one DMA issue + wait, no per-step overhead, no VMEM
        # staging, no (sublane, lane) tiling constraints for any dtype.
        in_specs=[pl.BlockSpec(memory_space=pl.ANY)],
        out_specs=pl.BlockSpec(memory_space=pl.ANY),
        scratch_shapes=[pltpu.SemaphoreType.DMA],
        cost_estimate=pl.CostEstimate(
            flops=0, transcendentals=0, bytes_accessed=2 * nbytes
        ),
    )(x2d)


class GAggregator:
    """JAX mirror of the (empty) PyTorch GAggregator module."""

    def __init__(self):
        # Reference __init__ is `pass`: no parameters to initialize.
        pass

    def forward(self):
        # Reference forward is `pass`: takes no inputs, returns None.
        return None

    # Extra helper (not part of the reference semantics): identity
    # pass-through of an NCHW tensor.  By default this is a no-op return;
    # force_kernel=True routes through the Pallas HBM->HBM DMA kernel.
    def passthrough(self, x_nchw: jax.Array, *, force_kernel: bool = False) -> jax.Array:
        n, c, h, w = x_nchw.shape
        if not force_kernel:
            return x_nchw
        x2d = x_nchw.reshape(n * c, h * w)  # free, contiguous metadata reshape
        y2d = pallas_passthrough(x2d, force_kernel=True)
        return y2d.reshape(n, c, h, w)


if __name__ == "__main__":
    key = jax.random.PRNGKey(0)
    x = jax.random.normal(key, (2, 4, 16, 16), dtype=jnp.float32)  # NCHW

    agg = GAggregator()

    # Exact reference-forward semantics: no args, returns None.
    out = agg.forward()
    assert out is None

    # Run the Pallas HBM->HBM copy kernel once and block on the result.
    y = agg.passthrough(x, force_kernel=True)
    jax.block_until_ready(y)
    assert y.shape == x.shape and y.dtype == x.dtype
    assert bool(jnp.allclose(y, x))

    # Default (short-circuit) path: identity with zero HBM traffic.
    z = agg.passthrough(x)
    assert z.shape == x.shape and z.dtype == x.dtype
    assert bool(jnp.allclose(z, x))

    print("KERNEL_OK")
</pallas_src>

<mosaic_0001>
module attributes {stable_mosaic.version = 11 : i64} {
  func.func @_hbm_copy_kernel(%arg0: memref<8x256xf32, #tpu.memory_space<any>>, %arg1: memref<8x256xf32, #tpu.memory_space<any>>, %arg2: memref<!tpu.dma_semaphore, #tpu.memory_space<semaphore_mem>>) attributes {dimension_semantics = [], scalar_prefetch = 0 : i64, scratch_operands = 1 : i64, tpu.core_type = #tpu.core_type<tc>} {
    tpu.enqueue_dma source(%arg0 : memref<8x256xf32, #tpu.memory_space<any>>) target(%arg1 : memref<8x256xf32, #tpu.memory_space<any>>) target_semaphore(%arg2 : memref<!tpu.dma_semaphore, #tpu.memory_space<semaphore_mem>>)
    tpu.wait_dma2 semaphore(%arg2 : memref<!tpu.dma_semaphore, #tpu.memory_space<semaphore_mem>>) src(%arg0 : memref<8x256xf32, #tpu.memory_space<any>>) dst(%arg1 : memref<8x256xf32, #tpu.memory_space<any>>)
    return
  }
}

</mosaic_0001>

<bundles_post_ra>
// kernel: tpu_custom_call.1
= control target key start
LH: loop header
LB: loop body
LE: loop exit
PB: predicated region body
PF: predicated region fallthrough
CT: control target
= control target key end

     0   :  { %s35_s6 = smov [#allocation2]   ;;  %s36_s7 = smov [#allocation3]   ;;  %s54_s0 = inlined_call_operand.hbm [shape: f32[8,256], index: 0, kind: input, shape index: {}]   ;;  %s55_s1 = inlined_call_operand.hbm [shape: f32[8,256], index: 1, kind: output, shape index: {}]  }
   0x1   :  { %s37_s8 = smov 0  }
   0x2   :  { %18 = dma.general %s54_s0, 256, %s55_s1, %s35_s6, %s36_s7, [#allocation4], %s37_s8, 0  }
   0x3   :  { %33 = dma.done.wait [#allocation2], 256 }
   0x4   :  { %34 = vsyncadd [#allocation2], 4294967040 }
   0x5   :  { %23 = vsyncmov [#allocation2] }
   0x8   :  { %s24_s13 = vpop.sfrf %23 }
   0x9   :  { %p29_p0 = scmp.ne.s32.totalorder %s24_s13, 0 }
   0xb   :  { %28 = shalt.err (%p29_p0)  }

</bundles_post_ra>
